<compile_context>
chip_gen: v7x
topology: tpu7x:2x2x1
jax: 0.10.0
libtpu: 0.0.40
codegen_flags: <defaults>
</compile_context>

<pallas_src>
import math

import jax
import jax.numpy as jnp
from jax.experimental import pallas as pl
from jax.experimental.pallas import tpu as pltpu


_VMEM_LIMIT_BYTES = 48 * 1024 * 1024     # > 32 MiB default scope, < v7x 64 MiB physical
_BLOCK_BUDGET_BYTES = 16 * 1024 * 1024   # padded, double-buffered working-set target
_TL_CAP = 128                            # row-tile cap (multiple of 32 -> legal for all dtypes)
_TD_CAP = 4096                           # lane-tile cap (multiple of 128)
_MIN_SPLIT_BYTES = 2 * 1024 * 1024       # above this, force >=2 grid steps (v7x megacore)


def build_pe(d_model: int = 1024, max_len: int = 49) -> jnp.ndarray:
    """Sinusoidal PE table identical to the PyTorch __init__ (odd d_model safe)."""
    position = jnp.arange(0.0, max_len, dtype=jnp.float32)[:, None]            # (L, 1)
    div_term = jnp.exp(
        jnp.arange(0.0, d_model, 2.0, dtype=jnp.float32)
        * -(math.log(10000.0) / float(d_model))
    )                                                                          # (ceil(D/2),)
    args = position * div_term                                                 # (L, ceil(D/2))
    pe = jnp.zeros((max_len, d_model), dtype=jnp.float32)
    pe = pe.at[:, 0::2].set(jnp.sin(args))
    pe = pe.at[:, 1::2].set(jnp.cos(args)[:, : d_model // 2])
    return pe                                                                  # (max_len, D) f32


def _pe_add_kernel(x_ref, pe_ref, o_ref):
    # x_ref/o_ref: (tb, tl, td); pe_ref: (tl, td) in the same (or f32) dtype.
    # Broadcast over the leading batch block dim is just a major-dim loop of
    # lane-dense VPU adds; trailing (tl, td) dims map to sublane/lane.
    o_ref[...] = (x_ref[...] + pe_ref[...]).astype(o_ref.dtype)


def _cdiv(a: int, b: int) -> int:
    return -(-a // b)


def _round_up(v: int, m: int) -> int:
    return ((v + m - 1) // m) * m


def _sublane_multiple(itemsize: int) -> int:
    # f32 -> 8 rows/tile, bf16/f16 -> 16, int8/fp8 -> 32 (sublane packing).
    return 8 * max(1, 4 // itemsize)


def _padded_bytes(rows: int, cols: int, sub: int, itemsize: int) -> int:
    return _round_up(rows, sub) * _round_up(cols, 128) * itemsize


def _choose_tiles(B, L, D, x_itemsize, pe_itemsize):
    sub_x = _sublane_multiple(x_itemsize)
    sub_pe = _sublane_multiple(pe_itemsize)
    sub_row = max(sub_x, sub_pe)

    # Full extents when modest (always legal); otherwise aligned cdiv tiles so
    # block bytes stay bounded on every generation (incl. v7x's 64 MiB VMEM).
    tl = L if L <= _TL_CAP else _TL_CAP          # _TL_CAP is a multiple of 32
    td = D if D <= _TD_CAP else _TD_CAP          # _TD_CAP is a multiple of 128

    # Padded, double-buffered working set: 2x pe block + 2x (x + out) blocks.
    x_row_bytes = _padded_bytes(tl, td, sub_x, x_itemsize)     # per batch row of a block
    pe_bytes = _padded_bytes(tl, td, sub_pe, pe_itemsize)
    avail = max(_BLOCK_BUDGET_BYTES - 2 * pe_bytes, 4 * x_row_bytes)
    tb = min(B, max(1, avail // (4 * x_row_bytes)))

    # v7x megacore: never leave a single-block grid when the tensor is big
    # enough to benefit from splitting across two TensorCores.
    total_bytes = B * L * D * x_itemsize
    if (total_bytes >= _MIN_SPLIT_BYTES
            and _cdiv(B, tb) * _cdiv(L, tl) * _cdiv(D, td) == 1):
        if B >= 2:
            tb = _cdiv(B, 2)
        elif D >= 2 * 128:
            td = _round_up(_cdiv(D, 2), 128)
        elif L >= 2 * sub_row:
            tl = _round_up(_cdiv(L, 2), sub_row)

    return tb, tl, td


@jax.jit
def positional_encoding(x: jnp.ndarray, pe: jnp.ndarray) -> jnp.ndarray:
    """x: (B, L, D); pe: (max_len, D) f32 table with L <= max_len. Returns x + pe[:L]."""
    B, L, D = x.shape
    max_len, d_model = pe.shape
    assert d_model == D and L <= max_len, (x.shape, pe.shape)

    # Half-precision inputs: carry pe in the same dtype (halves pe HBM traffic
    # and its padded VMEM footprint; native bf16 VPU add on v6e/v7x).  f32
    # inputs keep the exact f32 add.
    if jnp.issubdtype(x.dtype, jnp.floating) and jnp.dtype(x.dtype).itemsize == 2:
        pe_dtype = x.dtype
    else:
        pe_dtype = jnp.float32
    pe2 = pe[:L].astype(pe_dtype)                               # (L, D)

    x_itemsize = jnp.dtype(x.dtype).itemsize
    pe_itemsize = jnp.dtype(pe_dtype).itemsize
    tb, tl, td = _choose_tiles(B, L, D, x_itemsize, pe_itemsize)
    grid = (_cdiv(B, tb), _cdiv(L, tl), _cdiv(D, td))

    return pl.pallas_call(
        _pe_add_kernel,
        out_shape=jax.ShapeDtypeStruct((B, L, D), x.dtype),
        grid_spec=pltpu.PrefetchScalarGridSpec(
            num_scalar_prefetch=0,
            grid=grid,
            in_specs=[
                pl.BlockSpec((tb, tl, td), lambda b, l, d: (b, l, d)),   # x block
                pl.BlockSpec((tl, td), lambda b, l, d: (l, d)),          # pe block (const over b)
            ],
            out_specs=pl.BlockSpec((tb, tl, td), lambda b, l, d: (b, l, d)),
        ),
        compiler_params=pltpu.CompilerParams(
            dimension_semantics=("parallel", "parallel", "parallel"),
            vmem_limit_bytes=_VMEM_LIMIT_BYTES,
        ),
        cost_estimate=pl.CostEstimate(
            flops=B * L * D,
            transcendentals=0,
            bytes_accessed=2 * B * L * D * x_itemsize + L * D * pe_itemsize,
        ),
    )(x, pe2)


if __name__ == "__main__":
    # Shapes from the module defaults: d_model=1024, max_len=49, small batch.
    B, L, D = 2, 49, 1024
    key = jax.random.PRNGKey(0)
    x = jax.random.normal(key, (B, L, D), dtype=jnp.float32)

    pe = build_pe(d_model=D, max_len=L)

    # Plain-JAX reference with the PyTorch forward semantics.
    ref = x + pe[None, :L, :]

    out = positional_encoding(x, pe)
    out = jax.block_until_ready(out)

    assert out.shape == (B, L, D)
    assert jnp.allclose(out, ref, atol=1e-6, rtol=1e-6)

    print("KERNEL_OK")
</pallas_src>

<mosaic_0001>
module attributes {stable_mosaic.version = 11 : i64} {
  func.func @_pe_add_kernel(%arg0: i32, %arg1: i32, %arg2: i32, %arg3: memref<2x49x1024xf32, #tpu.memory_space<vmem>>, %arg4: memref<49x1024xf32, #tpu.memory_space<vmem>>, %arg5: memref<2x49x1024xf32, #tpu.memory_space<vmem>>) attributes {dimension_semantics = [#tpu.dimension_semantics<parallel>, #tpu.dimension_semantics<parallel>, #tpu.dimension_semantics<parallel>], iteration_bounds = array<i64: 1, 1, 1>, scalar_prefetch = 0 : i64, scratch_operands = 0 : i64, tpu.core_type = #tpu.core_type<tc>, window_params = [{transform_indices = @transform_0, window_bounds = array<i64: 2, 49, 1024>}, {transform_indices = @transform_1, window_bounds = array<i64: 49, 1024>}, {transform_indices = @transform_2, window_bounds = array<i64: 2, 49, 1024>}]} {
    %c0 = arith.constant 0 : index
    %c0_0 = arith.constant 0 : index
    %c0_1 = arith.constant 0 : index
    %0 = vector.load %arg3[%c0, %c0_0, %c0_1] : memref<2x49x1024xf32, #tpu.memory_space<vmem>>, vector<2x49x1024xf32>
    %c0_2 = arith.constant 0 : index
    %c0_3 = arith.constant 0 : index
    %1 = vector.load %arg4[%c0_2, %c0_3] : memref<49x1024xf32, #tpu.memory_space<vmem>>, vector<49x1024xf32>
    %2 = vector.shape_cast %1 : vector<49x1024xf32> to vector<1x49x1024xf32>
    %3 = vector.broadcast %2 : vector<1x49x1024xf32> to vector<2x49x1024xf32>
    %4 = arith.addf %0, %3 : vector<2x49x1024xf32>
    %c0_4 = arith.constant 0 : index
    %c0_5 = arith.constant 0 : index
    %c0_6 = arith.constant 0 : index
    %5 = vector.load %arg5[%c0_4, %c0_5, %c0_6] : memref<2x49x1024xf32, #tpu.memory_space<vmem>>, vector<2x49x1024xf32>
    tpu.vector_store %arg5[%c0_4, %c0_5, %c0_6], %4 {strides = array<i32>} : memref<2x49x1024xf32, #tpu.memory_space<vmem>>, vector<2x49x1024xf32>,
    return
  }
  func.func @transform_0(%arg0: i32, %arg1: i32, %arg2: i32) -> (i32, i32, i32) {
    %c0_i32 = arith.constant 0 : i32
    return %arg0, %arg1, %arg2 : i32, i32, i32
  }
  func.func @transform_1(%arg0: i32, %arg1: i32, %arg2: i32) -> (i32, i32) {
    %c0_i32 = arith.constant 0 : i32
    return %arg1, %arg2 : i32, i32
  }
  func.func @transform_2(%arg0: i32, %arg1: i32, %arg2: i32) -> (i32, i32, i32) {
    %c0_i32 = arith.constant 0 : i32
    return %arg0, %arg1, %arg2 : i32, i32, i32
  }
}

</mosaic_0001>

<bundles_post_ra>
// kernel: positional_encoding.1
= control target key start
LH: loop header
LB: loop body
LE: loop exit
PB: predicated region body
PF: predicated region fallthrough
CT: control target
= control target key end

     0   :  { %s1486_s0 = inlined_call_operand.vmem [shape: f32[2,49,1024], index: 0, kind: input, shape index: {}]   ;;  %s1487_s1 = inlined_call_operand.vmem [shape: f32[49,1024], index: 1, kind: input, shape index: {}]   ;;  %s1488_s2 = inlined_call_operand.vmem [shape: f32[2,49,1024], index: 2, kind: output, shape index: {}]  }
   0x1   :  { %v11_v0 = vld [vmem:[%s1486_s0] sm:$0xff]  ;;  %v12_v2 = vld [vmem:[%s1486_s0 + $0x8] sm:$0xff]  ;;  %v13_v5 = vld [vmem:[%s1486_s0 + $0x10] sm:$0xff] }
   0x2   :  { %v428_v1 = vld [vmem:[%s1487_s1] sm:$0xff]  ;;  %v437_v4 = vld [vmem:[%s1487_s1 + $0x8] sm:$0xff]  ;;  %v445_v6 = vld [vmem:[%s1487_s1 + $0x10] sm:$0xff] }
   0x3   :  { %v179_v3 = vadd.f32 %v428_v1, %v11_v0  ;;  %v180_v7 = vadd.f32 %v437_v4, %v12_v2  ;;  %v181_v8 = vadd.f32 %v445_v6, %v13_v5  ;;  %v14_v9 = vld [vmem:[%s1486_s0 + $0x18] sm:$0xff]  ;;  %v15_v11 = vld [vmem:[%s1486_s0 + $0x20] sm:$0xff]  ;;  %v16_v14 = vld [vmem:[%s1486_s0 + $0x28] sm:$0xff] }
   0x4   :  { %v455_v10 = vld [vmem:[%s1487_s1 + $0x18] sm:$0xff]  ;;  %v467_v13 = vld [vmem:[%s1487_s1 + $0x20] sm:$0xff]  ;;  %v475_v15 = vld [vmem:[%s1487_s1 + $0x28] sm:$0xff] }
   0x5   :  { %291 = vst [vmem:[%s1488_s2] sm:$0xff] %v179_v3  ;;  %v182_v12 = vadd.f32 %v455_v10, %v14_v9  ;;  %292 = vst [vmem:[%s1488_s2 + $0x8] sm:$0xff] %v180_v7  ;;  %v183_v16 = vadd.f32 %v467_v13, %v15_v11  ;;  %v184_v17 = vadd.f32 %v475_v15, %v16_v14  ;;  %v17_v18 = vld [vmem:[%s1486_s0 + $0x30] sm:$0xff]  ;;  %v18_v20 = vld [vmem:[%s1486_s0 + $0x38] sm:$0xff] }
   0x6   :  { %293 = vst [vmem:[%s1488_s2 + $0x10] sm:$0xff] %v181_v8  ;;  %v491_v19 = vld [vmem:[%s1487_s1 + $0x30] sm:$0xff]  ;;  %v503_v22 = vld [vmem:[%s1487_s1 + $0x38] sm:$0xff]  ;;  %v19_v23 = vld [vmem:[%s1486_s0 + $0x40] sm:$0xff] }
   0x7   :  { %294 = vst [vmem:[%s1488_s2 + $0x18] sm:$0xff] %v182_v12  ;;  %v185_v21 = vadd.f32 %v491_v19, %v17_v18  ;;  %v511_v24 = vld [vmem:[%s1487_s1 + $0x40] sm:$0xff]  ;;  %295 = vst [vmem:[%s1488_s2 + $0x20] sm:$0xff] %v183_v16  ;;  %v186_v25 = vadd.f32 %v503_v22, %v18_v20  ;;  %v20_v27 = vld [vmem:[%s1486_s0 + $0x48] sm:$0xff] }
   0x8   :  { %296 = vst [vmem:[%s1488_s2 + $0x28] sm:$0xff] %v184_v17  ;;  %v187_v26 = vadd.f32 %v511_v24, %v19_v23  ;;  %v527_v28 = vld [vmem:[%s1487_s1 + $0x48] sm:$0xff]  ;;  %v21_v29 = vld [vmem:[%s1486_s0 + $0x50] sm:$0xff]  ;;  %v22_v32 = vld [vmem:[%s1486_s0 + $0x58] sm:$0xff] }
   0x9   :  { %297 = vst [vmem:[%s1488_s2 + $0x30] sm:$0xff] %v185_v21  ;;  %v188_v30 = vadd.f32 %v527_v28, %v20_v27  ;;  %v539_v31 = vld [vmem:[%s1487_s1 + $0x50] sm:$0xff]  ;;  %v547_v33 = vld [vmem:[%s1487_s1 + $0x58] sm:$0xff]  ;;  %298 = vst [vmem:[%s1488_s2 + $0x38] sm:$0xff] %v186_v25 }
   0xa   :  { %299 = vst [vmem:[%s1488_s2 + $0x40] sm:$0xff] %v187_v26  ;;  %v189_v34 = vadd.f32 %v539_v31, %v21_v29  ;;  %v190_v35 = vadd.f32 %v547_v33, %v22_v32  ;;  %v23_v36 = vld [vmem:[%s1486_s0 + $0x60] sm:$0xff]  ;;  %v24_v38 = vld [vmem:[%s1486_s0 + $0x68] sm:$0xff]  ;;  %v25_v41 = vld [vmem:[%s1486_s0 + $0x70] sm:$0xff] }
   0xb   :  { %v563_v37 = vld [vmem:[%s1487_s1 + $0x60] sm:$0xff]  ;;  %300 = vst [vmem:[%s1488_s2 + $0x48] sm:$0xff] %v188_v30  ;;  %v575_v40 = vld [vmem:[%s1487_s1 + $0x68] sm:$0xff]  ;;  %v583_v42 = vld [vmem:[%s1487_s1 + $0x70] sm:$0xff] }
   0xc   :  { %v191_v39 = vadd.f32 %v563_v37, %v23_v36  ;;  %301 = vst [vmem:[%s1488_s2 + $0x50] sm:$0xff] %v189_v34  ;;  %302 = vst [vmem:[%s1488_s2 + $0x58] sm:$0xff] %v190_v35  ;;  %v192_v43 = vadd.f32 %v575_v40, %v24_v38  ;;  %v193_v44 = vadd.f32 %v583_v42, %v25_v41  ;;  %v26_v45 = vld [vmem:[%s1486_s0 + $0x78] sm:$0xff]  ;;  %v27_v47 = vld [vmem:[%s1486_s0 + $0x80] sm:$0xff] }
   0xd   :  { %v599_v46 = vld [vmem:[%s1487_s1 + $0x78] sm:$0xff]  ;;  %v611_v49 = vld [vmem:[%s1487_s1 + $0x80] sm:$0xff]  ;;  %v28_v50 = vld [vmem:[%s1486_s0 + $0x88] sm:$0xff] }
   0xe   :  { %303 = vst [vmem:[%s1488_s2 + $0x60] sm:$0xff] %v191_v39  ;;  %v194_v48 = vadd.f32 %v599_v46, %v26_v45  ;;  %v619_v51 = vld [vmem:[%s1487_s1 + $0x88] sm:$0xff]  ;;  %304 = vst [vmem:[%s1488_s2 + $0x68] sm:$0xff] %v192_v43  ;;  %v195_v52 = vadd.f32 %v611_v49, %v27_v47  ;;  %v29_v54 = vld [vmem:[%s1486_s0 + $0x90] sm:$0xff] }
   0xf   :  { %305 = vst [vmem:[%s1488_s2 + $0x70] sm:$0xff] %v193_v44  ;;  %v196_v53 = vadd.f32 %v619_v51, %v28_v50  ;;  %v635_v55 = vld [vmem:[%s1487_s1 + $0x90] sm:$0xff]  ;;  %v30_v56 = vld [vmem:[%s1486_s0 + $0x98] sm:$0xff]  ;;  %v31_v59 = vld [vmem:[%s1486_s0 + $0xa0] sm:$0xff] }
  0x10   :  { %306 = vst [vmem:[%s1488_s2 + $0x78] sm:$0xff] %v194_v48  ;;  %v197_v57 = vadd.f32 %v635_v55, %v29_v54  ;;  %v647_v58 = vld [vmem:[%s1487_s1 + $0x98] sm:$0xff]  ;;  %v655_v60 = vld [vmem:[%s1487_s1 + $0xa0] sm:$0xff]  ;;  %307 = vst [vmem:[%s1488_s2 + $0x80] sm:$0xff] %v195_v52 }
  0x11   :  { %308 = vst [vmem:[%s1488_s2 + $0x88] sm:$0xff] %v196_v53  ;;  %v198_v61 = vadd.f32 %v647_v58, %v30_v56  ;;  %v199_v62 = vadd.f32 %v655_v60, %v31_v59  ;;  %v32_v63 = vld [vmem:[%s1486_s0 + $0xa8] sm:$0xff]  ;;  %v33_v2 = vld [vmem:[%s1486_s0 + $0xb0] sm:$0xff]  ;;  %v34_v7 = vld [vmem:[%s1486_s0 + $0xb8] sm:$0xff] }
  0x12   :  { %v671_v0 = vld [vmem:[%s1487_s1 + $0xa8] sm:$0xff]  ;;  %309 = vst [vmem:[%s1488_s2 + $0x90] sm:$0xff] %v197_v57  ;;  %v683_v5 = vld [vmem:[%s1487_s1 + $0xb0] sm:$0xff]  ;;  %v691_v8 = vld [vmem:[%s1487_s1 + $0xb8] sm:$0xff] }
  0x13   :  { %v200_v3 = vadd.f32 %v671_v0, %v32_v63  ;;  %310 = vst [vmem:[%s1488_s2 + $0x98] sm:$0xff] %v198_v61  ;;  %311 = vst [vmem:[%s1488_s2 + $0xa0] sm:$0xff] %v199_v62  ;;  %v201_v9 = vadd.f32 %v683_v5, %v33_v2  ;;  %v202_v11 = vadd.f32 %v691_v8, %v34_v7  ;;  %v35_v12 = vld [vmem:[%s1486_s0 + $0xc0] sm:$0xff]  ;;  %v36_v16 = vld [vmem:[%s1486_s0 + $0xc8] sm:$0xff] }
  0x14   :  { %v707_v14 = vld [vmem:[%s1487_s1 + $0xc0] sm:$0xff]  ;;  %v719_v18 = vld [vmem:[%s1487_s1 + $0xc8] sm:$0xff]  ;;  %v37_v20 = vld [vmem:[%s1486_s0 + $0xd0] sm:$0xff] }
  0x15   :  { %312 = vst [vmem:[%s1488_s2 + $0xa8] sm:$0xff] %v200_v3  ;;  %v203_v17 = vadd.f32 %v707_v14, %v35_v12  ;;  %v727_v21 = vld [vmem:[%s1487_s1 + $0xd0] sm:$0xff]  ;;  %313 = vst [vmem:[%s1488_s2 + $0xb0] sm:$0xff] %v201_v9  ;;  %v204_v23 = vadd.f32 %v719_v18, %v36_v16  ;;  %v38_v26 = vld [vmem:[%s1486_s0 + $0xd8] sm:$0xff] }
  0x16   :  { %314 = vst [vmem:[%s1488_s2 + $0xb8] sm:$0xff] %v202_v11  ;;  %v205_v25 = vadd.f32 %v727_v21, %v37_v20  ;;  %v743_v27 = vld [vmem:[%s1487_s1 + $0xd8] sm:$0xff]  ;;  %v39_v29 = vld [vmem:[%s1486_s0 + $0xe0] sm:$0xff]  ;;  %v40_v34 = vld [vmem:[%s1486_s0 + $0xe8] sm:$0xff] }
  0x17   :  { %315 = vst [vmem:[%s1488_s2 + $0xc0] sm:$0xff] %v203_v17  ;;  %v206_v30 = vadd.f32 %v743_v27, %v38_v26  ;;  %v755_v32 = vld [vmem:[%s1487_s1 + $0xe0] sm:$0xff]  ;;  %v763_v35 = vld [vmem:[%s1487_s1 + $0xe8] sm:$0xff]  ;;  %316 = vst [vmem:[%s1488_s2 + $0xc8] sm:$0xff] %v204_v23 }
  0x18   :  { %317 = vst [vmem:[%s1488_s2 + $0xd0] sm:$0xff] %v205_v25  ;;  %v207_v36 = vadd.f32 %v755_v32, %v39_v29  ;;  %v208_v38 = vadd.f32 %v763_v35, %v40_v34  ;;  %v41_v39 = vld [vmem:[%s1486_s0 + $0xf0] sm:$0xff]  ;;  %v42_v43 = vld [vmem:[%s1486_s0 + $0xf8] sm:$0xff]  ;;  %v43_v47 = vld [vmem:[%s1486_s0 + $0x100] sm:$0xff] }
  0x19   :  { %v779_v41 = vld [vmem:[%s1487_s1 + $0xf0] sm:$0xff]  ;;  %318 = vst [vmem:[%s1488_s2 + $0xd8] sm:$0xff] %v206_v30  ;;  %v791_v45 = vld [vmem:[%s1487_s1 + $0xf8] sm:$0xff]  ;;  %v799_v48 = vld [vmem:[%s1487_s1 + $0x100] sm:$0xff] }
  0x1a   :  { %v209_v44 = vadd.f32 %v779_v41, %v41_v39  ;;  %319 = vst [vmem:[%s1488_s2 + $0xe0] sm:$0xff] %v207_v36  ;;  %320 = vst [vmem:[%s1488_s2 + $0xe8] sm:$0xff] %v208_v38  ;;  %v210_v50 = vadd.f32 %v791_v45, %v42_v43  ;;  %v211_v52 = vadd.f32 %v799_v48, %v43_v47  ;;  %v44_v53 = vld [vmem:[%s1486_s0 + $0x108] sm:$0xff]  ;;  %v45_v56 = vld [vmem:[%s1486_s0 + $0x110] sm:$0xff] }
  0x1b   :  { %v815_v54 = vld [vmem:[%s1487_s1 + $0x108] sm:$0xff]  ;;  %v827_v59 = vld [vmem:[%s1487_s1 + $0x110] sm:$0xff]  ;;  %v46_v61 = vld [vmem:[%s1486_s0 + $0x118] sm:$0xff] }
  0x1c   :  { %321 = vst [vmem:[%s1488_s2 + $0xf0] sm:$0xff] %v209_v44  ;;  %v212_v57 = vadd.f32 %v815_v54, %v44_v53  ;;  %v835_v62 = vld [vmem:[%s1487_s1 + $0x118] sm:$0xff]  ;;  %322 = vst [vmem:[%s1488_s2 + $0xf8] sm:$0xff] %v210_v50  ;;  %v213_v63 = vadd.f32 %v827_v59, %v45_v56  ;;  %v47_v3 = vld [vmem:[%s1486_s0 + $0x120] sm:$0xff] }
  0x1d   :  { %323 = vst [vmem:[%s1488_s2 + $0x100] sm:$0xff] %v211_v52  ;;  %v214_v2 = vadd.f32 %v835_v62, %v46_v61  ;;  %v851_v7 = vld [vmem:[%s1487_s1 + $0x120] sm:$0xff]  ;;  %v48_v9 = vld [vmem:[%s1486_s0 + $0x128] sm:$0xff]  ;;  %v49_v16 = vld [vmem:[%s1486_s0 + $0x130] sm:$0xff] }
  0x1e   :  { %324 = vst [vmem:[%s1488_s2 + $0x108] sm:$0xff] %v212_v57  ;;  %v215_v11 = vadd.f32 %v851_v7, %v47_v3  ;;  %v863_v12 = vld [vmem:[%s1487_s1 + $0x128] sm:$0xff]  ;;  %v871_v17 = vld [vmem:[%s1487_s1 + $0x130] sm:$0xff]  ;;  %325 = vst [vmem:[%s1488_s2 + $0x110] sm:$0xff] %v213_v63 }
  0x1f   :  { %326 = vst [vmem:[%s1488_s2 + $0x118] sm:$0xff] %v214_v2  ;;  %v216_v20 = vadd.f32 %v863_v12, %v48_v9  ;;  %v217_v23 = vadd.f32 %v871_v17, %v49_v16  ;;  %v50_v25 = vld [vmem:[%s1486_s0 + $0x138] sm:$0xff]  ;;  %v51_v29 = vld [vmem:[%s1486_s0 + $0x140] sm:$0xff]  ;;  %v52_v36 = vld [vmem:[%s1486_s0 + $0x148] sm:$0xff] }
  0x20   :  { %v887_v26 = vld [vmem:[%s1487_s1 + $0x138] sm:$0xff]  ;;  %327 = vst [vmem:[%s1488_s2 + $0x120] sm:$0xff] %v215_v11  ;;  %v899_v34 = vld [vmem:[%s1487_s1 + $0x140] sm:$0xff]  ;;  %v907_v38 = vld [vmem:[%s1487_s1 + $0x148] sm:$0xff] }
  0x21   :  { %v218_v30 = vadd.f32 %v887_v26, %v50_v25  ;;  %328 = vst [vmem:[%s1488_s2 + $0x128] sm:$0xff] %v216_v20  ;;  %329 = vst [vmem:[%s1488_s2 + $0x130] sm:$0xff] %v217_v23  ;;  %v219_v39 = vadd.f32 %v899_v34, %v51_v29  ;;  %v220_v43 = vadd.f32 %v907_v38, %v52_v36  ;;  %v53_v44 = vld [vmem:[%s1486_s0 + $0x150] sm:$0xff]  ;;  %v54_v50 = vld [vmem:[%s1486_s0 + $0x158] sm:$0xff] }
  0x22   :  { %v923_v47 = vld [vmem:[%s1487_s1 + $0x150] sm:$0xff]  ;;  %v935_v53 = vld [vmem:[%s1487_s1 + $0x158] sm:$0xff]  ;;  %v55_v56 = vld [vmem:[%s1486_s0 + $0x160] sm:$0xff] }
  0x23   :  { %330 = vst [vmem:[%s1488_s2 + $0x138] sm:$0xff] %v218_v30  ;;  %v221_v52 = vadd.f32 %v923_v47, %v53_v44  ;;  %v943_v57 = vld [vmem:[%s1487_s1 + $0x160] sm:$0xff]  ;;  %331 = vst [vmem:[%s1488_s2 + $0x140] sm:$0xff] %v219_v39  ;;  %v222_v61 = vadd.f32 %v935_v53, %v54_v50  ;;  %v56_v2 = vld [vmem:[%s1486_s0 + $0x168] sm:$0xff] }
  0x24   :  { %332 = vst [vmem:[%s1488_s2 + $0x148] sm:$0xff] %v220_v43  ;;  %v223_v63 = vadd.f32 %v943_v57, %v55_v56  ;;  %v959_v3 = vld [vmem:[%s1487_s1 + $0x168] sm:$0xff]  ;;  %v57_v9 = vld [vmem:[%s1486_s0 + $0x170] sm:$0xff]  ;;  %v58_v20 = vld [vmem:[%s1486_s0 + $0x178] sm:$0xff] }
  0x25   :  { %333 = vst [vmem:[%s1488_s2 + $0x150] sm:$0xff] %v221_v52  ;;  %v224_v11 = vadd.f32 %v959_v3, %v56_v2  ;;  %v971_v16 = vld [vmem:[%s1487_s1 + $0x170] sm:$0xff]  ;;  %v979_v23 = vld [vmem:[%s1487_s1 + $0x178] sm:$0xff]  ;;  %334 = vst [vmem:[%s1488_s2 + $0x158] sm:$0xff] %v222_v61 }
  0x26   :  { %335 = vst [vmem:[%s1488_s2 + $0x160] sm:$0xff] %v223_v63  ;;  %v225_v25 = vadd.f32 %v971_v16, %v57_v9  ;;  %v226_v29 = vadd.f32 %v979_v23, %v58_v20  ;;  %v59_v30 = vld [vmem:[%s1486_s0 + $0x180] sm:$0x1]  ;;  %v60_v39 = vld [vmem:[%s1486_s0 + $0x188] sm:$0x1] }
  0x27   :  { %v995_v36 = vld [vmem:[%s1487_s1 + $0x180] sm:$0x1]  ;;  %336 = vst [vmem:[%s1488_s2 + $0x168] sm:$0xff] %v224_v11  ;;  %v1007_v44 = vld [vmem:[%s1487_s1 + $0x188] sm:$0x1] }
  0x28   :  { %v227_v43 = vadd.f32 %v995_v36, %v59_v30  ;;  %v61_v50 = vld [vmem:[%s1486_s0 + $0x190] sm:$0x1]  ;;  %337 = vst [vmem:[%s1488_s2 + $0x170] sm:$0xff] %v225_v25  ;;  %338 = vst [vmem:[%s1488_s2 + $0x178] sm:$0xff] %v226_v29  ;;  %v228_v56 = vadd.f32 %v1007_v44, %v60_v39  ;;  %v62_v63 = vld [vmem:[%s1486_s0 + $0x198] sm:$0x1] }
  0x29   :  { %v1015_v52 = vld [vmem:[%s1487_s1 + $0x190] sm:$0x1]  ;;  %v1031_v2 = vld [vmem:[%s1487_s1 + $0x198] sm:$0x1]  ;;  %v63_v9 = vld [vmem:[%s1486_s0 + $0x1a0] sm:$0x1] }
  0x2a   :  { %v229_v61 = vadd.f32 %v1015_v52, %v61_v50  ;;  %339 = vst [vmem:[%s1488_s2 + $0x180] sm:$0x1] %v227_v43  ;;  %v230_v11 = vadd.f32 %v1031_v2, %v62_v63  ;;  %v1043_v20 = vld [vmem:[%s1487_s1 + $0x1a0] sm:$0x1]  ;;  %v64_v25 = vld [vmem:[%s1486_s0 + $0x1a8] sm:$0x1] }
  0x2b   :  { %1492 = vst [vmem:[#allocation2_spill] sm:$0xff] %v1043_v20  ;;  %v1051_v29 = vld [vmem:[%s1487_s1 + $0x1a8] sm:$0x1]  ;;  %340 = vst [vmem:[%s1488_s2 + $0x188] sm:$0x1] %v228_v56  ;;  %v231_v30 = vadd.f32 %v1043_v20, %v63_v9  ;;  %v67_v9 = vld [vmem:[%s1486_s0 + $0x1c0] sm:$0xff] }
  0x2c   :  { %1493 = vst [vmem:[#allocation3_spill] sm:$0xff] %v1051_v29  ;;  %341 = vst [vmem:[%s1488_s2 + $0x190] sm:$0x1] %v229_v61  ;;  %v232_v39 = vadd.f32 %v1051_v29, %v64_v25  ;;  %v65_v43 = vld [vmem:[%s1486_s0 + $0x1b0] sm:$0x1]  ;;  %v68_v25 = vld [vmem:[%s1486_s0 + $0x1c8] sm:$0xff] }
  0x2d   :  { %v1067_v50 = vld [vmem:[%s1487_s1 + $0x1b0] sm:$0x1]  ;;  %v66_v56 = vld [vmem:[%s1486_s0 + $0x1b8] sm:$0x1]  ;;  %342 = vst [vmem:[%s1488_s2 + $0x198] sm:$0x1] %v230_v11 }
  0x2e   :  { %1494 = vst [vmem:[#allocation4_spill] sm:$0xff] %v1067_v50  ;;  %v233_v61 = vadd.f32 %v1067_v50, %v65_v43  ;;  %v1079_v63 = vld [vmem:[%s1487_s1 + $0x1b8] sm:$0x1]  ;;  %343 = vst [vmem:[%s1488_s2 + $0x1a0] sm:$0x1] %v231_v30  ;;  %v235_v43 = vadd.f32 %v428_v1, %v67_v9  ;;  %v236_v50 = vadd.f32 %v437_v4, %v68_v25  ;;  %v69_v29 = vld [vmem:[%s1486_s0 + $0x1d0] sm:$0xff] }
  0x2f   :  { %344 = vst [vmem:[%s1488_s2 + $0x1a8] sm:$0x1] %v232_v39  ;;  %v234_v11 = vadd.f32 %v1079_v63, %v66_v56  ;;  %v70_v20 = vld [vmem:[%s1486_s0 + $0x1d8] sm:$0xff]  ;;  %v71_v30 = vld [vmem:[%s1486_s0 + $0x1e0] sm:$0xff]  ;;  %v237_v1 = vadd.f32 %v445_v6, %v69_v29  ;;  %v72_v56 = vld [vmem:[%s1486_s0 + $0x1e8] sm:$0xff] }
  0x30   :  { %345 = vst [vmem:[%s1488_s2 + $0x1b0] sm:$0x1] %v233_v61  ;;  %v238_v4 = vadd.f32 %v455_v10, %v70_v20  ;;  %v239_v39 = vadd.f32 %v467_v13, %v71_v30  ;;  %v73_v9 = vld [vmem:[%s1486_s0 + $0x1f0] sm:$0xff]  ;;  %v74_v25 = vld [vmem:[%s1486_s0 + $0x1f8] sm:$0xff]  ;;  %347 = vst [vmem:[%s1488_s2 + $0x1c0] sm:$0xff] %v235_v43  ;;  %v240_v6 = vadd.f32 %v475_v15, %v72_v56 }
  0x31   :  { %346 = vst [vmem:[%s1488_s2 + $0x1b8] sm:$0x1] %v234_v11  ;;  %348 = vst [vmem:[%s1488_s2 + $0x1c8] sm:$0xff] %v236_v50  ;;  %v241_v10 = vadd.f32 %v491_v19, %v73_v9  ;;  %v242_v13 = vadd.f32 %v503_v22, %v74_v25  ;;  %v75_v20 = vld [vmem:[%s1486_s0 + $0x200] sm:$0xff]  ;;  %v76_v29 = vld [vmem:[%s1486_s0 + $0x208] sm:$0xff] }
  0x32   :  { %v77_v61 = vld [vmem:[%s1486_s0 + $0x210] sm:$0xff]  ;;  %349 = vst [vmem:[%s1488_s2 + $0x1d0] sm:$0xff] %v237_v1  ;;  %350 = vst [vmem:[%s1488_s2 + $0x1d8] sm:$0xff] %v238_v4  ;;  %v243_v15 = vadd.f32 %v511_v24, %v75_v20  ;;  %v244_v19 = vadd.f32 %v527_v28, %v76_v29  ;;  %v78_v50 = vld [vmem:[%s1486_s0 + $0x218] sm:$0xff] }
  0x33   :  { %351 = vst [vmem:[%s1488_s2 + $0x1e0] sm:$0xff] %v239_v39  ;;  %v245_v22 = vadd.f32 %v539_v31, %v77_v61  ;;  %v79_v11 = vld [vmem:[%s1486_s0 + $0x220] sm:$0xff]  ;;  %v80_v43 = vld [vmem:[%s1486_s0 + $0x228] sm:$0xff]  ;;  %352 = vst [vmem:[%s1488_s2 + $0x1e8] sm:$0xff] %v240_v6  ;;  %v246_v24 = vadd.f32 %v547_v33, %v78_v50 }
  0x34   :  { %353 = vst [vmem:[%s1488_s2 + $0x1f0] sm:$0xff] %v241_v10  ;;  %354 = vst [vmem:[%s1488_s2 + $0x1f8] sm:$0xff] %v242_v13  ;;  %v247_v28 = vadd.f32 %v563_v37, %v79_v11  ;;  %v248_v31 = vadd.f32 %v575_v40, %v80_v43  ;;  %v81_v30 = vld [vmem:[%s1486_s0 + $0x230] sm:$0xff]  ;;  %v82_v1 = vld [vmem:[%s1486_s0 + $0x238] sm:$0xff] }
  0x35   :  { %v83_v4 = vld [vmem:[%s1486_s0 + $0x240] sm:$0xff]  ;;  %355 = vst [vmem:[%s1488_s2 + $0x200] sm:$0xff] %v243_v15  ;;  %356 = vst [vmem:[%s1488_s2 + $0x208] sm:$0xff] %v244_v19  ;;  %v249_v33 = vadd.f32 %v583_v42, %v81_v30  ;;  %v250_v37 = vadd.f32 %v599_v46, %v82_v1  ;;  %v84_v39 = vld [vmem:[%s1486_s0 + $0x248] sm:$0xff] }
  0x36   :  { %357 = vst [vmem:[%s1488_s2 + $0x210] sm:$0xff] %v245_v22  ;;  %v251_v40 = vadd.f32 %v611_v49, %v83_v4  ;;  %v85_v56 = vld [vmem:[%s1486_s0 + $0x250] sm:$0xff]  ;;  %v86_v9 = vld [vmem:[%s1486_s0 + $0x258] sm:$0xff]  ;;  %358 = vst [vmem:[%s1488_s2 + $0x218] sm:$0xff] %v246_v24  ;;  %v252_v42 = vadd.f32 %v619_v51, %v84_v39 }
  0x37   :  { %359 = vst [vmem:[%s1488_s2 + $0x220] sm:$0xff] %v247_v28  ;;  %360 = vst [vmem:[%s1488_s2 + $0x228] sm:$0xff] %v248_v31  ;;  %v253_v46 = vadd.f32 %v635_v55, %v85_v56  ;;  %v254_v49 = vadd.f32 %v647_v58, %v86_v9  ;;  %v87_v25 = vld [vmem:[%s1486_s0 + $0x260] sm:$0xff]  ;;  %v88_v6 = vld [vmem:[%s1486_s0 + $0x268] sm:$0xff] }
  0x38   :  { %v89_v10 = vld [vmem:[%s1486_s0 + $0x270] sm:$0xff]  ;;  %361 = vst [vmem:[%s1488_s2 + $0x230] sm:$0xff] %v249_v33  ;;  %362 = vst [vmem:[%s1488_s2 + $0x238] sm:$0xff] %v250_v37  ;;  %v255_v51 = vadd.f32 %v655_v60, %v87_v25  ;;  %v256_v55 = vadd.f32 %v671_v0, %v88_v6  ;;  %v90_v13 = vld [vmem:[%s1486_s0 + $0x278] sm:$0xff] }
  0x39   :  { %363 = vst [vmem:[%s1488_s2 + $0x240] sm:$0xff] %v251_v40  ;;  %v257_v58 = vadd.f32 %v683_v5, %v89_v10  ;;  %v91_v20 = vld [vmem:[%s1486_s0 + $0x280] sm:$0xff]  ;;  %v92_v29 = vld [vmem:[%s1486_s0 + $0x288] sm:$0xff]  ;;  %364 = vst [vmem:[%s1488_s2 + $0x248] sm:$0xff] %v252_v42  ;;  %v258_v60 = vadd.f32 %v691_v8, %v90_v13 }
  0x3a   :  { %365 = vst [vmem:[%s1488_s2 + $0x250] sm:$0xff] %v253_v46  ;;  %366 = vst [vmem:[%s1488_s2 + $0x258] sm:$0xff] %v254_v49  ;;  %v259_v0 = vadd.f32 %v707_v14, %v91_v20  ;;  %v260_v5 = vadd.f32 %v719_v18, %v92_v29  ;;  %v93_v61 = vld [vmem:[%s1486_s0 + $0x290] sm:$0xff]  ;;  %v94_v15 = vld [vmem:[%s1486_s0 + $0x298] sm:$0xff] }
  0x3b   :  { %v95_v19 = vld [vmem:[%s1486_s0 + $0x2a0] sm:$0xff]  ;;  %367 = vst [vmem:[%s1488_s2 + $0x260] sm:$0xff] %v255_v51  ;;  %368 = vst [vmem:[%s1488_s2 + $0x268] sm:$0xff] %v256_v55  ;;  %v261_v8 = vadd.f32 %v727_v21, %v93_v61  ;;  %v262_v14 = vadd.f32 %v743_v27, %v94_v15  ;;  %v96_v22 = vld [vmem:[%s1486_s0 + $0x2a8] sm:$0xff] }
  0x3c   :  { %369 = vst [vmem:[%s1488_s2 + $0x270] sm:$0xff] %v257_v58  ;;  %v263_v18 = vadd.f32 %v755_v32, %v95_v19  ;;  %v97_v50 = vld [vmem:[%s1486_s0 + $0x2b0] sm:$0xff]  ;;  %v98_v11 = vld [vmem:[%s1486_s0 + $0x2b8] sm:$0xff]  ;;  %370 = vst [vmem:[%s1488_s2 + $0x278] sm:$0xff] %v258_v60  ;;  %v264_v21 = vadd.f32 %v763_v35, %v96_v22 }
  0x3d   :  { %371 = vst [vmem:[%s1488_s2 + $0x280] sm:$0xff] %v259_v0  ;;  %372 = vst [vmem:[%s1488_s2 + $0x288] sm:$0xff] %v260_v5  ;;  %v265_v27 = vadd.f32 %v779_v41, %v97_v50  ;;  %v266_v32 = vadd.f32 %v791_v45, %v98_v11  ;;  %v99_v43 = vld [vmem:[%s1486_s0 + $0x2c0] sm:$0xff]  ;;  %v100_v24 = vld [vmem:[%s1486_s0 + $0x2c8] sm:$0xff] }
  0x3e   :  { %v101_v28 = vld [vmem:[%s1486_s0 + $0x2d0] sm:$0xff]  ;;  %373 = vst [vmem:[%s1488_s2 + $0x290] sm:$0xff] %v261_v8  ;;  %374 = vst [vmem:[%s1488_s2 + $0x298] sm:$0xff] %v262_v14  ;;  %v267_v35 = vadd.f32 %v799_v48, %v99_v43  ;;  %v268_v41 = vadd.f32 %v815_v54, %v100_v24  ;;  %v102_v31 = vld [vmem:[%s1486_s0 + $0x2d8] sm:$0xff] }
  0x3f   :  { %375 = vst [vmem:[%s1488_s2 + $0x2a0] sm:$0xff] %v263_v18  ;;  %v269_v45 = vadd.f32 %v827_v59, %v101_v28  ;;  %v103_v30 = vld [vmem:[%s1486_s0 + $0x2e0] sm:$0xff]  ;;  %v104_v1 = vld [vmem:[%s1486_s0 + $0x2e8] sm:$0xff]  ;;  %376 = vst [vmem:[%s1488_s2 + $0x2a8] sm:$0xff] %v264_v21  ;;  %v270_v48 = vadd.f32 %v835_v62, %v102_v31 }
  0x40   :  { %377 = vst [vmem:[%s1488_s2 + $0x2b0] sm:$0xff] %v265_v27  ;;  %378 = vst [vmem:[%s1488_s2 + $0x2b8] sm:$0xff] %v266_v32  ;;  %v271_v54 = vadd.f32 %v851_v7, %v103_v30  ;;  %v272_v59 = vadd.f32 %v863_v12, %v104_v1  ;;  %v105_v4 = vld [vmem:[%s1486_s0 + $0x2f0] sm:$0xff]  ;;  %v106_v33 = vld [vmem:[%s1486_s0 + $0x2f8] sm:$0xff] }
  0x41   :  { %v107_v37 = vld [vmem:[%s1486_s0 + $0x300] sm:$0xff]  ;;  %379 = vst [vmem:[%s1488_s2 + $0x2c0] sm:$0xff] %v267_v35  ;;  %380 = vst [vmem:[%s1488_s2 + $0x2c8] sm:$0xff] %v268_v41  ;;  %v273_v62 = vadd.f32 %v871_v17, %v105_v4  ;;  %v274_v7 = vadd.f32 %v887_v26, %v106_v33  ;;  %v108_v40 = vld [vmem:[%s1486_s0 + $0x308] sm:$0xff] }
  0x42   :  { %381 = vst [vmem:[%s1488_s2 + $0x2d0] sm:$0xff] %v269_v45  ;;  %v275_v12 = vadd.f32 %v899_v34, %v107_v37  ;;  %v109_v39 = vld [vmem:[%s1486_s0 + $0x310] sm:$0xff]  ;;  %v110_v56 = vld [vmem:[%s1486_s0 + $0x318] sm:$0xff]  ;;  %382 = vst [vmem:[%s1488_s2 + $0x2d8] sm:$0xff] %v270_v48  ;;  %v276_v17 = vadd.f32 %v907_v38, %v108_v40 }
  0x43   :  { %383 = vst [vmem:[%s1488_s2 + $0x2e0] sm:$0xff] %v271_v54  ;;  %384 = vst [vmem:[%s1488_s2 + $0x2e8] sm:$0xff] %v272_v59  ;;  %v277_v26 = vadd.f32 %v923_v47, %v109_v39  ;;  %v278_v34 = vadd.f32 %v935_v53, %v110_v56  ;;  %v111_v9 = vld [vmem:[%s1486_s0 + $0x320] sm:$0xff]  ;;  %v112_v42 = vld [vmem:[%s1486_s0 + $0x328] sm:$0xff] }
  0x44   :  { %v113_v46 = vld [vmem:[%s1486_s0 + $0x330] sm:$0xff]  ;;  %385 = vst [vmem:[%s1488_s2 + $0x2f0] sm:$0xff] %v273_v62  ;;  %386 = vst [vmem:[%s1488_s2 + $0x2f8] sm:$0xff] %v274_v7  ;;  %v279_v38 = vadd.f32 %v943_v57, %v111_v9  ;;  %v280_v47 = vadd.f32 %v959_v3, %v112_v42  ;;  %v114_v49 = vld [vmem:[%s1486_s0 + $0x338] sm:$0xff] }
  0x45   :  { %387 = vst [vmem:[%s1488_s2 + $0x300] sm:$0xff] %v275_v12  ;;  %v281_v53 = vadd.f32 %v971_v16, %v113_v46  ;;  %v115_v25 = vld [vmem:[%s1486_s0 + $0x340] sm:$0x1]  ;;  %v116_v6 = vld [vmem:[%s1486_s0 + $0x348] sm:$0x1]  ;;  %388 = vst [vmem:[%s1488_s2 + $0x308] sm:$0xff] %v276_v17  ;;  %v282_v57 = vadd.f32 %v979_v23, %v114_v49 }
  0x46   :  { %389 = vst [vmem:[%s1488_s2 + $0x310] sm:$0xff] %v277_v26  ;;  %390 = vst [vmem:[%s1488_s2 + $0x318] sm:$0xff] %v278_v34  ;;  %v283_v3 = vadd.f32 %v995_v36, %v115_v25  ;;  %v284_v16 = vadd.f32 %v1007_v44, %v116_v6  ;;  %v117_v10 = vld [vmem:[%s1486_s0 + $0x350] sm:$0x1]  ;;  %v118_v51 = vld [vmem:[%s1486_s0 + $0x358] sm:$0x1] }
  0x47   :  { %v119_v55 = vld [vmem:[%s1486_s0 + $0x360] sm:$0x1]  ;;  %391 = vst [vmem:[%s1488_s2 + $0x320] sm:$0xff] %v279_v38  ;;  %392 = vst [vmem:[%s1488_s2 + $0x328] sm:$0xff] %v280_v47  ;;  %v285_v23 = vadd.f32 %v1015_v52, %v117_v10  ;;  %v286_v36 = vadd.f32 %v1031_v2, %v118_v51  ;;  %v120_v13 = vld [vmem:[%s1486_s0 + $0x368] sm:$0x1] }
  0x48   :  { %393 = vst [vmem:[%s1488_s2 + $0x330] sm:$0xff] %v281_v53  ;;  %v1495_v44 = vld [vmem:[#allocation2_spill] sm:$0xff]  ;;  %v121_v20 = vld [vmem:[%s1486_s0 + $0x370] sm:$0x1]  ;;  %v122_v29 = vld [vmem:[%s1486_s0 + $0x378] sm:$0x1] }
  0x49   :  { %v287_v58 = vadd.f32 %v1495_v44, %v119_v55  ;;  %394 = vst [vmem:[%s1488_s2 + $0x338] sm:$0xff] %v282_v57  ;;  %395 = vst [vmem:[%s1488_s2 + $0x340] sm:$0x1] %v283_v3  ;;  %v1496_v52 = vld [vmem:[#allocation3_spill] sm:$0xff]  ;;  %v1497_v60 = vld [vmem:[#allocation4_spill] sm:$0xff]  ;;  %v290_v5 = vadd.f32 %v1079_v63, %v122_v29 }
  0x4a   :  { %396 = vst [vmem:[%s1488_s2 + $0x348] sm:$0x1] %v284_v16  ;;  %v288_v2 = vadd.f32 %v1496_v52, %v120_v13  ;;  %v289_v0 = vadd.f32 %v1497_v60, %v121_v20  ;;  %397 = vst [vmem:[%s1488_s2 + $0x350] sm:$0x1] %v285_v23 }
  0x4b   :  { %398 = vst [vmem:[%s1488_s2 + $0x358] sm:$0x1] %v286_v36  ;;  %399 = vst [vmem:[%s1488_s2 + $0x360] sm:$0x1] %v287_v58 }
  0x4c   :  { %400 = vst [vmem:[%s1488_s2 + $0x368] sm:$0x1] %v288_v2  ;;  %401 = vst [vmem:[%s1488_s2 + $0x370] sm:$0x1] %v289_v0 }
  0x4d   :  { %402 = vst [vmem:[%s1488_s2 + $0x378] sm:$0x1] %v290_v5 }

</bundles_post_ra>
